<compile_context>
chip_gen: v7x
topology: tpu7x:2x2x1
jax: 0.10.0
libtpu: 0.0.40
codegen_flags: <defaults>
</compile_context>

<pallas_src>
import functools

import jax
import jax.numpy as jnp
from jax.experimental import pallas as pl
from jax.experimental.pallas import tpu as pltpu


def _branch_forward(s_bf, a_bf, w1, b, w2, w3, w4_row, num_inputs):
    """One Q head. s_bf/a_bf: (B, ni)/(B, na) bf16. Returns (B,) f32."""
    # Layer 1, fused "concat": [s, a] @ W1 == s @ W1[:ni] + a @ W1[ni:].
    h = (jnp.dot(s_bf, w1[:num_inputs], preferred_element_type=jnp.float32)
         + jnp.dot(a_bf, w1[num_inputs:], preferred_element_type=jnp.float32)
         + b[0:1])
    h = jnp.maximum(h, 0.0).astype(jnp.bfloat16)

    h = jnp.dot(h, w2, preferred_element_type=jnp.float32) + b[1:2]
    h = jnp.maximum(h, 0.0).astype(jnp.bfloat16)

    h = jnp.dot(h, w3, preferred_element_type=jnp.float32) + b[2:3]
    h = jnp.maximum(h, 0.0).astype(jnp.bfloat16)

    # Final layer as broadcast multiply + lane reduce (VPU/XLU, not a (H,1) MXU op).
    return jnp.sum(h.astype(jnp.float32) * w4_row.astype(jnp.float32), axis=-1)


def _qnetwork_fused_kernel(num_inputs, state_ref, action_ref, w1_ref, b_ref,
                           w23_ref, w4_ref, bout_ref, q_ref):
    """Single invocation, both branches unrolled. q_ref: (2, 1, B)."""
    B = q_ref.shape[-1]
    s = state_ref[...].astype(jnp.bfloat16)
    a = action_ref[...].astype(jnp.bfloat16)
    for br in range(2):                       # unrolled: both Q heads, one step
        q = _branch_forward(s, a, w1_ref[br], b_ref[br],
                            w23_ref[br, 0], w23_ref[br, 1], w4_ref[br],
                            num_inputs)
        q_ref[br] = (q + bout_ref[br]).reshape(1, B)


def _qnetwork_split_kernel(num_inputs, state_ref, action_ref, w1_ref, b_ref,
                           w23_ref, w4_ref, bout_ref, q_ref):
    """grid=(2,) variant: one branch per grid step (2 TCs on v7x)."""
    B = q_ref.shape[-1]
    branch = pl.program_id(0)
    s = state_ref[...].astype(jnp.bfloat16)
    a = action_ref[...].astype(jnp.bfloat16)
    q = _branch_forward(s, a, w1_ref[0], b_ref[0],
                        w23_ref[0, 0], w23_ref[0, 1], w4_ref[0], num_inputs)
    q_ref[0] = (q + bout_ref[branch]).reshape(1, B)


def qnetwork_forward(state, action, packed, *, split_branches=False):
    """Returns (q1, q2), each (B, 1) f32.  `packed` from pack_qnetwork_params."""
    state = state.astype(jnp.float32)
    action = action.astype(jnp.float32)
    B, ni = state.shape
    na = action.shape[1]
    H = packed["w23"].shape[-1]

    flops = 2 * 2 * B * ((ni + na) * H + 2 * H * H + H)
    weight_bytes = sum(int(v.size) * v.dtype.itemsize for v in packed.values())
    bytes_accessed = weight_bytes + 4 * (state.size + action.size + 2 * B)
    cost = pl.CostEstimate(flops=flops, transcendentals=0,
                           bytes_accessed=int(bytes_accessed))

    out_shape = jax.ShapeDtypeStruct((2, 1, B), jnp.float32)
    smem_spec = pl.BlockSpec(memory_space=pltpu.MemorySpace.SMEM)

    if split_branches:
        # v7x option: one branch per TensorCore.  Benchmark vs. fused default.
        kernel = functools.partial(_qnetwork_split_kernel, ni)
        resident = lambda i: (0, 0)            # stays VMEM-resident across steps
        per3 = lambda i: (i, 0, 0)
        per4 = lambda i: (i, 0, 0, 0)
        q = pl.pallas_call(
            kernel,
            out_shape=out_shape,
            grid=(2,),
            in_specs=[
                pl.BlockSpec((B, ni), resident),           # state
                pl.BlockSpec((B, na), resident),           # action
                pl.BlockSpec((1, ni + na, H), per3),       # w1 (both halves)
                pl.BlockSpec((1, 3, H), per3),             # b1/b2/b3
                pl.BlockSpec((1, 2, H, H), per4),          # w2/w3
                pl.BlockSpec((1, 1, H), per3),             # w4 row
                smem_spec,                                 # final biases (2,)
            ],
            out_specs=pl.BlockSpec((1, 1, B), per3),
            compiler_params=pltpu.CompilerParams(
                dimension_semantics=("parallel",)),
            cost_estimate=cost,
        )(state, action, packed["w1"], packed["b123"], packed["w23"],
          packed["w4"], packed["b_out"])
    else:
        # Default: single invocation, whole operands DMA'd once into VMEM.
        kernel = functools.partial(_qnetwork_fused_kernel, ni)
        vmem_spec = pl.BlockSpec(memory_space=pltpu.MemorySpace.VMEM)
        q = pl.pallas_call(
            kernel,
            out_shape=out_shape,
            in_specs=[vmem_spec, vmem_spec, vmem_spec, vmem_spec, vmem_spec,
                      vmem_spec, smem_spec],
            out_specs=vmem_spec,
            cost_estimate=cost,
        )(state, action, packed["w1"], packed["b123"], packed["w23"],
          packed["w4"], packed["b_out"])

    # Lane-major (2, 1, B) kernel output -> (B, 1) columns for the caller.
    return q[0].T, q[1].T


def pack_qnetwork_params(params):
    """Branch-stack and merge params; weights -> bf16, biases stay f32.

    params: w1..w8 with shape (in_dim, out_dim) f32, b1..b8 with shape (1, out_dim).
    """
    bf16 = jnp.bfloat16
    packed = {
        # (2, ni+na, H): full first-layer weights (state+action rows).
        "w1": jnp.stack([params["w1"], params["w5"]]).astype(bf16),
        # (2, 3, H): hidden-layer biases, f32.
        "b123": jnp.stack([
            jnp.concatenate([params["b1"], params["b2"], params["b3"]], axis=0),
            jnp.concatenate([params["b5"], params["b6"], params["b7"]], axis=0),
        ]).astype(jnp.float32),
        # (2, 2, H, H): the two H x H hidden layers.
        "w23": jnp.stack([
            jnp.stack([params["w2"], params["w3"]]),
            jnp.stack([params["w6"], params["w7"]]),
        ]).astype(bf16),
        # (2, 1, H): final layer as a lane-dense row.
        "w4": jnp.stack([params["w4"].T, params["w8"].T]).astype(bf16),
        # (2,): final scalar biases (SMEM).
        "b_out": jnp.stack([params["b4"][0, 0],
                            params["b8"][0, 0]]).astype(jnp.float32),
    }
    return packed


def _xavier_uniform(key, fan_in, fan_out, gain=1.0):
    # Matches torch.nn.init.xavier_uniform_: U(-a, a), a = gain*sqrt(6/(fan_in+fan_out)).
    # PyTorch weight is (out, in); we store the transpose (in, out) so the
    # kernel computes x @ W directly (same distribution, symmetric).
    a = gain * jnp.sqrt(6.0 / (fan_in + fan_out))
    return jax.random.uniform(key, (fan_in, fan_out), jnp.float32, -a, a)


def init_qnetwork_params(key, num_inputs, num_actions, hidden_dim=256):
    in_dim = num_inputs + num_actions
    layer_dims = [
        (in_dim, hidden_dim),      # linear1
        (hidden_dim, hidden_dim),  # linear2
        (hidden_dim, hidden_dim),  # linear3
        (hidden_dim, 1),           # linear4
        (in_dim, hidden_dim),      # linear5
        (hidden_dim, hidden_dim),  # linear6
        (hidden_dim, hidden_dim),  # linear7
        (hidden_dim, 1),           # linear8
    ]
    keys = jax.random.split(key, len(layer_dims))
    params = {}
    for i, ((fi, fo), k) in enumerate(zip(layer_dims, keys), start=1):
        params[f"w{i}"] = _xavier_uniform(k, fi, fo)
        params[f"b{i}"] = jnp.zeros((1, fo), jnp.float32)
    return params


def qnetwork_reference(state, action, params, compute_dtype=jnp.float32):
    """Plain-JAX reference. compute_dtype=bf16 mirrors the kernel's mixed precision."""
    xu = jnp.concatenate([state, action], axis=1).astype(jnp.float32)

    def layer(h, w, b, relu):
        y = jnp.dot(h.astype(compute_dtype), w.astype(compute_dtype),
                    preferred_element_type=jnp.float32) + b
        return jnp.maximum(y, 0.0) if relu else y

    def branch(i0):
        h = layer(xu, params[f"w{i0}"], params[f"b{i0}"], True)
        h = layer(h, params[f"w{i0 + 1}"], params[f"b{i0 + 1}"], True)
        h = layer(h, params[f"w{i0 + 2}"], params[f"b{i0 + 2}"], True)
        return layer(h, params[f"w{i0 + 3}"], params[f"b{i0 + 3}"], False)

    return branch(1), branch(5)


if __name__ == "__main__":
    num_inputs, num_actions, hidden_dim = 8, 4, 256
    batch = 8

    key = jax.random.PRNGKey(0)
    kp, ks, ka = jax.random.split(key, 3)

    params = init_qnetwork_params(kp, num_inputs, num_actions, hidden_dim)
    packed = pack_qnetwork_params(params)

    state = jax.random.normal(ks, (batch, num_inputs), jnp.float32)
    action = jax.random.normal(ka, (batch, num_actions), jnp.float32)

    # References: tight check vs. bf16-weight reference, loose vs. full f32.
    r1_bf, r2_bf = qnetwork_reference(state, action, params, jnp.bfloat16)
    r1_f32, r2_f32 = qnetwork_reference(state, action, params, jnp.float32)

    for split in (False, True):   # fused single-step (default) and v7x 2-TC split
        q1, q2 = qnetwork_forward(state, action, packed, split_branches=split)
        q1 = jax.block_until_ready(q1)
        q2 = jax.block_until_ready(q2)
        assert q1.shape == (batch, 1) and q2.shape == (batch, 1)

        assert jnp.allclose(q1, r1_bf, atol=2e-3, rtol=2e-3)
        assert jnp.allclose(q2, r2_bf, atol=2e-3, rtol=2e-3)
        assert jnp.allclose(q1, r1_f32, atol=5e-2, rtol=5e-2)
        assert jnp.allclose(q2, r2_f32, atol=5e-2, rtol=5e-2)

    print("KERNEL_OK")
</pallas_src>

<mosaic_0001>
module attributes {stable_mosaic.version = 11 : i64} {
  func.func @_qnetwork_fused_kernel(%arg0: memref<8x8xf32, #tpu.memory_space<vmem>>, %arg1: memref<8x4xf32, #tpu.memory_space<vmem>>, %arg2: memref<2x12x256xbf16, #tpu.memory_space<vmem>>, %arg3: memref<2x3x256xf32, #tpu.memory_space<vmem>>, %arg4: memref<2x2x256x256xbf16, #tpu.memory_space<vmem>>, %arg5: memref<2x1x256xbf16, #tpu.memory_space<vmem>>, %arg6: memref<2xf32, #tpu.memory_space<smem>>, %arg7: memref<2x1x8xf32, #tpu.memory_space<vmem>>) attributes {dimension_semantics = [], scalar_prefetch = 0 : i64, scratch_operands = 0 : i64, tpu.core_type = #tpu.core_type<tc>} {
    %c0 = arith.constant 0 : index
    %c0_0 = arith.constant 0 : index
    %0 = vector.load %arg0[%c0, %c0_0] : memref<8x8xf32, #tpu.memory_space<vmem>>, vector<8x8xf32>
    %1 = arith.truncf %0 : vector<8x8xf32> to vector<8x8xbf16>
    %c0_1 = arith.constant 0 : index
    %c0_2 = arith.constant 0 : index
    %2 = vector.load %arg1[%c0_1, %c0_2] : memref<8x4xf32, #tpu.memory_space<vmem>>, vector<8x4xf32>
    %3 = arith.truncf %2 : vector<8x4xf32> to vector<8x4xbf16>
    %c0_3 = arith.constant 0 : index
    %c0_4 = arith.constant 0 : index
    %c0_5 = arith.constant 0 : index
    %4 = vector.load %arg2[%c0_3, %c0_4, %c0_5] : memref<2x12x256xbf16, #tpu.memory_space<vmem>>, vector<1x12x256xbf16>
    %5 = vector.shape_cast %4 : vector<1x12x256xbf16> to vector<12x256xbf16>
    %c0_6 = arith.constant 0 : index
    %c0_7 = arith.constant 0 : index
    %c0_8 = arith.constant 0 : index
    %6 = vector.load %arg3[%c0_6, %c0_7, %c0_8] : memref<2x3x256xf32, #tpu.memory_space<vmem>>, vector<1x3x256xf32>
    %7 = vector.shape_cast %6 : vector<1x3x256xf32> to vector<3x256xf32>
    %c0_9 = arith.constant 0 : index
    %c0_10 = arith.constant 0 : index
    %c0_11 = arith.constant 0 : index
    %c0_12 = arith.constant 0 : index
    %8 = vector.load %arg4[%c0_9, %c0_10, %c0_11, %c0_12] : memref<2x2x256x256xbf16, #tpu.memory_space<vmem>>, vector<1x1x256x256xbf16>
    %9 = vector.shape_cast %8 : vector<1x1x256x256xbf16> to vector<256x256xbf16>
    %c0_13 = arith.constant 0 : index
    %c1 = arith.constant 1 : index
    %c0_14 = arith.constant 0 : index
    %c0_15 = arith.constant 0 : index
    %10 = vector.load %arg4[%c0_13, %c1, %c0_14, %c0_15] : memref<2x2x256x256xbf16, #tpu.memory_space<vmem>>, vector<1x1x256x256xbf16>
    %11 = vector.shape_cast %10 : vector<1x1x256x256xbf16> to vector<256x256xbf16>
    %c0_16 = arith.constant 0 : index
    %c0_17 = arith.constant 0 : index
    %c0_18 = arith.constant 0 : index
    %12 = vector.load %arg5[%c0_16, %c0_17, %c0_18] : memref<2x1x256xbf16, #tpu.memory_space<vmem>>, vector<1x1x256xbf16>
    %13 = vector.shape_cast %12 : vector<1x1x256xbf16> to vector<1x256xbf16>
    %14 = vector.extract_strided_slice %5 {offsets = [0, 0], sizes = [8, 256], strides = [1, 1]} : vector<12x256xbf16> to vector<8x256xbf16>
    %cst = arith.constant dense<0.000000e+00> : vector<8x256xf32>
    %15 = tpu.matmul %1, %14, %cst {dimension_numbers = #tpu.dot_dimension_numbers<[1], [0], [0], [1], [0, 0, 1, 1], [], []>} : vector<8x8xbf16>, vector<8x256xbf16>, vector<8x256xf32> -> vector<8x256xf32>
    %16 = vector.extract_strided_slice %5 {offsets = [8, 0], sizes = [4, 256], strides = [1, 1]} : vector<12x256xbf16> to vector<4x256xbf16>
    %cst_19 = arith.constant dense<0.000000e+00> : vector<8x256xf32>
    %17 = tpu.matmul %3, %16, %cst_19 {dimension_numbers = #tpu.dot_dimension_numbers<[1], [0], [0], [1], [0, 0, 1, 1], [], []>} : vector<8x4xbf16>, vector<4x256xbf16>, vector<8x256xf32> -> vector<8x256xf32>
    %18 = arith.addf %15, %17 : vector<8x256xf32>
    %19 = vector.extract_strided_slice %7 {offsets = [0, 0], sizes = [1, 256], strides = [1, 1]} : vector<3x256xf32> to vector<1x256xf32>
    %20 = vector.broadcast %19 : vector<1x256xf32> to vector<8x256xf32>
    %21 = arith.addf %18, %20 : vector<8x256xf32>
    %cst_20 = arith.constant 0.000000e+00 : f32
    %22 = vector.broadcast %cst_20 : f32 to vector<8x256xf32>
    %23 = arith.maximumf %21, %22 : vector<8x256xf32>
    %24 = arith.truncf %23 : vector<8x256xf32> to vector<8x256xbf16>
    %cst_21 = arith.constant dense<0.000000e+00> : vector<8x256xf32>
    %25 = tpu.matmul %24, %9, %cst_21 {dimension_numbers = #tpu.dot_dimension_numbers<[1], [0], [0], [1], [0, 0, 1, 1], [], []>} : vector<8x256xbf16>, vector<256x256xbf16>, vector<8x256xf32> -> vector<8x256xf32>
    %26 = vector.extract_strided_slice %7 {offsets = [1, 0], sizes = [1, 256], strides = [1, 1]} : vector<3x256xf32> to vector<1x256xf32>
    %27 = vector.broadcast %26 : vector<1x256xf32> to vector<8x256xf32>
    %28 = arith.addf %25, %27 : vector<8x256xf32>
    %cst_22 = arith.constant 0.000000e+00 : f32
    %29 = vector.broadcast %cst_22 : f32 to vector<8x256xf32>
    %30 = arith.maximumf %28, %29 : vector<8x256xf32>
    %31 = arith.truncf %30 : vector<8x256xf32> to vector<8x256xbf16>
    %cst_23 = arith.constant dense<0.000000e+00> : vector<8x256xf32>
    %32 = tpu.matmul %31, %11, %cst_23 {dimension_numbers = #tpu.dot_dimension_numbers<[1], [0], [0], [1], [0, 0, 1, 1], [], []>} : vector<8x256xbf16>, vector<256x256xbf16>, vector<8x256xf32> -> vector<8x256xf32>
    %33 = vector.extract_strided_slice %7 {offsets = [2, 0], sizes = [1, 256], strides = [1, 1]} : vector<3x256xf32> to vector<1x256xf32>
    %34 = vector.broadcast %33 : vector<1x256xf32> to vector<8x256xf32>
    %35 = arith.addf %32, %34 : vector<8x256xf32>
    %cst_24 = arith.constant 0.000000e+00 : f32
    %36 = vector.broadcast %cst_24 : f32 to vector<8x256xf32>
    %37 = arith.maximumf %35, %36 : vector<8x256xf32>
    %38 = arith.truncf %37 : vector<8x256xf32> to vector<8x256xbf16>
    %39 = arith.extf %38 : vector<8x256xbf16> to vector<8x256xf32>
    %40 = arith.extf %13 : vector<1x256xbf16> to vector<1x256xf32>
    %41 = vector.broadcast %40 : vector<1x256xf32> to vector<8x256xf32>
    %42 = arith.mulf %39, %41 : vector<8x256xf32>
    %cst_25 = arith.constant dense<0.000000e+00> : vector<8xf32>
    %43 = vector.multi_reduction <add>, %42, %cst_25 [1] : vector<8x256xf32> to vector<8xf32>
    %c0_26 = arith.constant 0 : index
    %44 = memref.load %arg6[%c0_26] : memref<2xf32, #tpu.memory_space<smem>>
    %45 = vector.broadcast %44 : f32 to vector<8xf32>
    %46 = arith.addf %43, %45 : vector<8xf32>
    %47 = vector.shape_cast %46 : vector<8xf32> to vector<1x8xf32>
    %c0_27 = arith.constant 0 : index
    %c0_28 = arith.constant 0 : index
    %c0_29 = arith.constant 0 : index
    %48 = vector.load %arg7[%c0_27, %c0_28, %c0_29] : memref<2x1x8xf32, #tpu.memory_space<vmem>>, vector<1x1x8xf32>
    %49 = vector.shape_cast %48 : vector<1x1x8xf32> to vector<1x8xf32>
    %50 = vector.shape_cast %47 : vector<1x8xf32> to vector<1x1x8xf32>
    tpu.vector_store %arg7[%c0_27, %c0_28, %c0_29], %50 {strides = array<i32>} : memref<2x1x8xf32, #tpu.memory_space<vmem>>, vector<1x1x8xf32>,
    %c1_30 = arith.constant 1 : index
    %c0_31 = arith.constant 0 : index
    %c0_32 = arith.constant 0 : index
    %51 = vector.load %arg2[%c1_30, %c0_31, %c0_32] : memref<2x12x256xbf16, #tpu.memory_space<vmem>>, vector<1x12x256xbf16>
    %52 = vector.shape_cast %51 : vector<1x12x256xbf16> to vector<12x256xbf16>
    %c1_33 = arith.constant 1 : index
    %c0_34 = arith.constant 0 : index
    %c0_35 = arith.constant 0 : index
    %53 = vector.load %arg3[%c1_33, %c0_34, %c0_35] : memref<2x3x256xf32, #tpu.memory_space<vmem>>, vector<1x3x256xf32>
    %54 = vector.shape_cast %53 : vector<1x3x256xf32> to vector<3x256xf32>
    %c1_36 = arith.constant 1 : index
    %c0_37 = arith.constant 0 : index
    %c0_38 = arith.constant 0 : index
    %c0_39 = arith.constant 0 : index
    %55 = vector.load %arg4[%c1_36, %c0_37, %c0_38, %c0_39] : memref<2x2x256x256xbf16, #tpu.memory_space<vmem>>, vector<1x1x256x256xbf16>
    %56 = vector.shape_cast %55 : vector<1x1x256x256xbf16> to vector<256x256xbf16>
    %c1_40 = arith.constant 1 : index
    %c1_41 = arith.constant 1 : index
    %c0_42 = arith.constant 0 : index
    %c0_43 = arith.constant 0 : index
    %57 = vector.load %arg4[%c1_40, %c1_41, %c0_42, %c0_43] : memref<2x2x256x256xbf16, #tpu.memory_space<vmem>>, vector<1x1x256x256xbf16>
    %58 = vector.shape_cast %57 : vector<1x1x256x256xbf16> to vector<256x256xbf16>
    %c1_44 = arith.constant 1 : index
    %c0_45 = arith.constant 0 : index
    %c0_46 = arith.constant 0 : index
    %59 = vector.load %arg5[%c1_44, %c0_45, %c0_46] : memref<2x1x256xbf16, #tpu.memory_space<vmem>>, vector<1x1x256xbf16>
    %60 = vector.shape_cast %59 : vector<1x1x256xbf16> to vector<1x256xbf16>
    %61 = vector.extract_strided_slice %52 {offsets = [0, 0], sizes = [8, 256], strides = [1, 1]} : vector<12x256xbf16> to vector<8x256xbf16>
    %cst_47 = arith.constant dense<0.000000e+00> : vector<8x256xf32>
    %62 = tpu.matmul %1, %61, %cst_47 {dimension_numbers = #tpu.dot_dimension_numbers<[1], [0], [0], [1], [0, 0, 1, 1], [], []>} : vector<8x8xbf16>, vector<8x256xbf16>, vector<8x256xf32> -> vector<8x256xf32>
    %63 = vector.extract_strided_slice %52 {offsets = [8, 0], sizes = [4, 256], strides = [1, 1]} : vector<12x256xbf16> to vector<4x256xbf16>
    %cst_48 = arith.constant dense<0.000000e+00> : vector<8x256xf32>
    %64 = tpu.matmul %3, %63, %cst_48 {dimension_numbers = #tpu.dot_dimension_numbers<[1], [0], [0], [1], [0, 0, 1, 1], [], []>} : vector<8x4xbf16>, vector<4x256xbf16>, vector<8x256xf32> -> vector<8x256xf32>
    %65 = arith.addf %62, %64 : vector<8x256xf32>
    %66 = vector.extract_strided_slice %54 {offsets = [0, 0], sizes = [1, 256], strides = [1, 1]} : vector<3x256xf32> to vector<1x256xf32>
    %67 = vector.broadcast %66 : vector<1x256xf32> to vector<8x256xf32>
    %68 = arith.addf %65, %67 : vector<8x256xf32>
    %cst_49 = arith.constant 0.000000e+00 : f32
    %69 = vector.broadcast %cst_49 : f32 to vector<8x256xf32>
    %70 = arith.maximumf %68, %69 : vector<8x256xf32>
    %71 = arith.truncf %70 : vector<8x256xf32> to vector<8x256xbf16>
    %cst_50 = arith.constant dense<0.000000e+00> : vector<8x256xf32>
    %72 = tpu.matmul %71, %56, %cst_50 {dimension_numbers = #tpu.dot_dimension_numbers<[1], [0], [0], [1], [0, 0, 1, 1], [], []>} : vector<8x256xbf16>, vector<256x256xbf16>, vector<8x256xf32> -> vector<8x256xf32>
    %73 = vector.extract_strided_slice %54 {offsets = [1, 0], sizes = [1, 256], strides = [1, 1]} : vector<3x256xf32> to vector<1x256xf32>
    %74 = vector.broadcast %73 : vector<1x256xf32> to vector<8x256xf32>
    %75 = arith.addf %72, %74 : vector<8x256xf32>
    %cst_51 = arith.constant 0.000000e+00 : f32
    %76 = vector.broadcast %cst_51 : f32 to vector<8x256xf32>
    %77 = arith.maximumf %75, %76 : vector<8x256xf32>
    %78 = arith.truncf %77 : vector<8x256xf32> to vector<8x256xbf16>
    %cst_52 = arith.constant dense<0.000000e+00> : vector<8x256xf32>
    %79 = tpu.matmul %78, %58, %cst_52 {dimension_numbers = #tpu.dot_dimension_numbers<[1], [0], [0], [1], [0, 0, 1, 1], [], []>} : vector<8x256xbf16>, vector<256x256xbf16>, vector<8x256xf32> -> vector<8x256xf32>
    %80 = vector.extract_strided_slice %54 {offsets = [2, 0], sizes = [1, 256], strides = [1, 1]} : vector<3x256xf32> to vector<1x256xf32>
    %81 = vector.broadcast %80 : vector<1x256xf32> to vector<8x256xf32>
    %82 = arith.addf %79, %81 : vector<8x256xf32>
    %cst_53 = arith.constant 0.000000e+00 : f32
    %83 = vector.broadcast %cst_53 : f32 to vector<8x256xf32>
    %84 = arith.maximumf %82, %83 : vector<8x256xf32>
    %85 = arith.truncf %84 : vector<8x256xf32> to vector<8x256xbf16>
    %86 = arith.extf %85 : vector<8x256xbf16> to vector<8x256xf32>
    %87 = arith.extf %60 : vector<1x256xbf16> to vector<1x256xf32>
    %88 = vector.broadcast %87 : vector<1x256xf32> to vector<8x256xf32>
    %89 = arith.mulf %86, %88 : vector<8x256xf32>
    %cst_54 = arith.constant dense<0.000000e+00> : vector<8xf32>
    %90 = vector.multi_reduction <add>, %89, %cst_54 [1] : vector<8x256xf32> to vector<8xf32>
    %c1_55 = arith.constant 1 : index
    %91 = memref.load %arg6[%c1_55] : memref<2xf32, #tpu.memory_space<smem>>
    %92 = vector.broadcast %91 : f32 to vector<8xf32>
    %93 = arith.addf %90, %92 : vector<8xf32>
    %94 = vector.shape_cast %93 : vector<8xf32> to vector<1x8xf32>
    %c1_56 = arith.constant 1 : index
    %c0_57 = arith.constant 0 : index
    %c0_58 = arith.constant 0 : index
    %95 = vector.load %arg7[%c1_56, %c0_57, %c0_58] : memref<2x1x8xf32, #tpu.memory_space<vmem>>, vector<1x1x8xf32>
    %96 = vector.shape_cast %95 : vector<1x1x8xf32> to vector<1x8xf32>
    %97 = vector.shape_cast %94 : vector<1x8xf32> to vector<1x1x8xf32>
    tpu.vector_store %arg7[%c1_56, %c0_57, %c0_58], %97 {strides = array<i32>} : memref<2x1x8xf32, #tpu.memory_space<vmem>>, vector<1x1x8xf32>,
    return
  }
}

</mosaic_0001>

<bundles_post_ra>
// kernel: tpu_custom_call.1
= control target key start
LH: loop header
LB: loop body
LE: loop exit
PB: predicated region body
PF: predicated region fallthrough
CT: control target
= control target key end

     0   :  { %12 = vsyncpa [#allocation3], 0  ;;  %s2084_s0 = inlined_call_operand.vmem [shape: f32[8,8], index: 0, kind: input, shape index: {}]   ;;  %s2085_s1 = inlined_call_operand.vmem [shape: f32[8,4], index: 1, kind: input, shape index: {}]   ;;  %s2086_s2 = inlined_call_operand.vmem [shape: bf16[2,12,256], index: 2, kind: input, shape index: {}]   ;;  %s2087_s3 = inlined_call_operand.vmem [shape: f32[2,3,256], index: 3, kind: input, shape index: {}]   ;;  %s2088_s4 = inlined_call_operand.hbm [shape: bf16[2,2,256,256], index: 4, kind: input, shape index: {}]   ;;  %s2089_s5 = inlined_call_operand.vmem [shape: bf16[2,1,256], index: 5, kind: input, shape index: {}]   ;;  %s2090_s6 = inlined_call_operand.vmem [shape: f32[2], index: 6, kind: input, shape index: {}]   ;;  %s2091_s7 = inlined_call_operand.hbm [shape: f32[2,1,8], index: 7, kind: output, shape index: {}]  }
   0x1   :  { %13 = vsyncpa [#allocation5], 0 }
   0x2   :  { %14 = vsyncpa [#allocation4], 0  ;;  %s1876_s24 = smov [#allocation2]   ;;  %s43_s28 = sshll.u32 %s2090_s6, 4  ;;  %s44_s28 = int_to_ptr.vmem [resolvable:$true] %s43_s28 }
   0x3   :  { %s28_s25 = sshll.u32 %s1876_s24, 4  ;;  %s1814_s8 = scalar_lea.hbm %s2088_s4, 16384  ;;  %s29_s25 = int_to_ptr.vmem [resolvable:$true] %s28_s25 }
   0x4   :  { %p1815_p0 = scmp.ne.s32.totalorder %s2088_s4, %s1814_s8  ;;  %p1818_p1 = scmp.lt.u32.totalorder %s1814_s8, %s2088_s4 }
   0x6   :  { %p1820_p2 = pnand %p1818_p1, %p1815_p0 }
   0x8   :  { %1823 = shalt.err (!%p1820_p2)
}
   0x9   :  { %s1824_s13 = scalar_lea.vmem %s29_s25, 16384  ;;  %p1829_p4 = scmp.lt.s32.totalorder %s29_s25, %s29_s25 }
   0xa   :  { %p1825_p3 = scmp.ne.s32.totalorder %s29_s25, %s1824_s13  ;;  %p1830_p5 = scmp.lt.s32.totalorder %s1824_s13, %s1824_s13 }
   0xc   :  { %p1831_p6 = por %p1830_p5, %p1829_p4 }
   0xe   :  { %p1832_p7 = pnand %p1831_p6, %p1825_p3 }
  0x10   :  { %1835 = shalt.err (!%p1832_p7)
}
  0x11   :  { %s1877_s6 = smov 128   ;;  %s1878_s14 = smov 8  }
  0x12   :  { %34 = dma.hbm_to_vmem [thread:$0]  %s2088_s4, 16384, %s29_s25, [#allocation3], %s1877_s6, %s1877_s6, %s1878_s14  }
  0x13   :  { %s1836_s17 = scalar_lea.vmem %s44_s28, 16  ;;  %p1841_p9 = scmp.lt.s32.totalorder %s44_s28, %s44_s28 }
  0x14   :  { %p1837_p8 = scmp.ne.s32.totalorder %s44_s28, %s1836_s17  ;;  %p1842_p10 = scmp.lt.s32.totalorder %s1836_s17, %s1836_s17 }
  0x16   :  { %p1843_p11 = por %p1842_p10, %p1841_p9 }
  0x18   :  { %p1844_p12 = pnand %p1843_p11, %p1837_p8 }
  0x1a   :  { %1847 = shalt.err (!%p1844_p12)
}
  0x1b   :  { %s1879_s18 = smov [#allocation6]  }
  0x1c   :  { %46 = dma.vmem_to_smem %s44_s28, 16, %s1879_s18, [#allocation5]  }
  0x1d   :  { %1870 = dma.done.wait [#allocation3], 16384  }
  0x1e   :  { %1871 = vsyncadd [#allocation3], 4294950912 }
  0x1f   :  { %1872 = dma.done.wait [#allocation5], 16  }
  0x20   :  { %1873 = vsyncadd [#allocation5], 4294967280 }
  0x21   :  { %53 = sfence }
  0x22   :  { %v60_v0 = vld [vmem:[%s2086_s2 + $0x8] sm:$0x33]  ;;  %vm137_vm0 = vcmask 1041408   ;;  %v59_v1 = vld [vmem:[%s2086_s2] sm:$0xff]  ;;  %vm194_vm1 = vcmask 1043456   ;;  %v1880_v6 = vmov 0  }
  0x23   :  { %v1458_v2 = vcombine.high %v60_v0, %v60_v0  ;;  %v1462_v3 = vcombine.high %v59_v1, %v59_v1  ;;  %v1457_v4 = vcombine.low %v60_v0, %v60_v0  ;;  %v1461_v5 = vcombine.low %v59_v1, %v59_v1  ;;  %176 = vmatprep.mubr.bf16.mxu0 %v1880_v6  ;;  %v57_v7 = vld [vmem:[%s2085_s1] sm:$0xff]  ;;  %v1623_v15 = vld [vmem:[#allocation2 + $0x14] ss:$8 sps:$4 sm:$0xff]   ;;  %v1621_v16 = vld [vmem:[#allocation2 + $0x10] ss:$8 sps:$4 sm:$0xff]   ;;  %s1881_s12 = smov [#allocation7]  }
  0x24   :  { %v55_v8 = vld [vmem:[%s2084_s0] sm:$0xff]  ;;  %233 = vmatprep.mubr.bf16.mxu1 %v1880_v6  ;;  %v1957_v11 = vpack.c.bf16 %v57_v7, %v57_v7  ;;  %vm133_vm2 = vcmask 31744   ;;  %vm190_vm3 = vcmask 64512   ;;  %v1629_v19 = vld [vmem:[#allocation2 + $0x34] ss:$8 sps:$4 sm:$0xff]   ;;  %vm751_vm4 = vcmask 57344  }
  0x25   :  { %1459 = vmatprep.subr.msk.bf16.mxu0 %vm137_vm0, %v1458_v2  ;;  %1463 = vmatprep.subr.msk.bf16.mxu1 %vm194_vm1, %v1462_v3  ;;  %v139_v9 = vsel %vm137_vm0, %v1457_v4, 0  ;;  %v196_v10 = vsel %vm194_vm1, %v1461_v5, 0  ;;  %v1959_v12 = vpack.c.bf16 %v55_v8, %v55_v8  ;;  %v1620_v13 = vld [vmem:[#allocation2 + $0x4] ss:$8 sps:$4 sm:$0xff]   ;;  %v1618_v14 = vld [vmem:[#allocation2] ss:$8 sps:$4 sm:$0xff]  }
  0x26   :  { %145 = vmatpush1.bf16.msra.mxu0 %v139_v9  ;;  %202 = vmatpush1.bf16.msra.mxu1 %v196_v10  ;;  %v1626_v17 = vld [vmem:[#allocation2 + $0x24] ss:$8 sps:$4 sm:$0xff]   ;;  %v1624_v18 = vld [vmem:[#allocation2 + $0x20] ss:$8 sps:$4 sm:$0xff]   ;;  %v1627_v20 = vld [vmem:[#allocation2 + $0x30] ss:$8 sps:$4 sm:$0xff]   ;;  %v243_v10 = vlaneseq }
  0x27   :  { %445 = vmatprep.subr.bf16.mxu0 %v1620_v13  ;;  %v1632_v21 = vld [vmem:[#allocation2 + $0x44] ss:$8 sps:$4 sm:$0xff]   ;;  %v1630_v22 = vld [vmem:[#allocation2 + $0x40] ss:$8 sps:$4 sm:$0xff]   ;;  %v1635_v23 = vld [vmem:[#allocation2 + $0x54] ss:$8 sps:$4 sm:$0xff]  }
  0x28   :  { %v1633_v24 = vld [vmem:[#allocation2 + $0x50] ss:$8 sps:$4 sm:$0xff]   ;;  %v1638_v25 = vld [vmem:[#allocation2 + $0x64] ss:$8 sps:$4 sm:$0xff]   ;;  %v1636_v26 = vld [vmem:[#allocation2 + $0x60] ss:$8 sps:$4 sm:$0xff]  }
  0x29   :  { %1460 = vmatmul.mubr.msk.bf16.vlgmr.msra.gmra.mrb[0].mxu0 %vm133_vm2, %v1957_v11  ;;  %1464 = vmatmul.mubr.msk.bf16.vlgmr.msra.gmra.mrb[0].mxu1 %vm190_vm3, %v1959_v12  ;;  %v1641_v27 = vld [vmem:[#allocation2 + $0x74] ss:$8 sps:$4 sm:$0xff]   ;;  %v1639_v28 = vld [vmem:[#allocation2 + $0x70] ss:$8 sps:$4 sm:$0xff]   ;;  %v1644_v29 = vld [vmem:[#allocation2 + $0x84] ss:$8 sps:$4 sm:$0xff]  }
  0x2a   :  { %446 = vmatpush1.bf16.msra.mxu0 %v1618_v14  ;;  %v1642_v30 = vld [vmem:[#allocation2 + $0x80] ss:$8 sps:$4 sm:$0xff]   ;;  %v1647_v31 = vld [vmem:[#allocation2 + $0x94] ss:$8 sps:$4 sm:$0xff]   ;;  %v1645_v32 = vld [vmem:[#allocation2 + $0x90] ss:$8 sps:$4 sm:$0xff]  }
  0x2b   :  { %447 = vmatprep.subr.bf16.mxu0 %v1623_v15  ;;  %v1650_v33 = vld [vmem:[#allocation2 + $0xa4] ss:$8 sps:$4 sm:$0xff]   ;;  %v1648_v34 = vld [vmem:[#allocation2 + $0xa0] ss:$8 sps:$4 sm:$0xff]   ;;  %v1653_v35 = vld [vmem:[#allocation2 + $0xb4] ss:$8 sps:$4 sm:$0xff]  }
  0x2c   :  { %v1651_v36 = vld [vmem:[#allocation2 + $0xb0] ss:$8 sps:$4 sm:$0xff]   ;;  %v1656_v37 = vld [vmem:[#allocation2 + $0xc4] ss:$8 sps:$4 sm:$0xff]   ;;  %v1654_v38 = vld [vmem:[#allocation2 + $0xc0] ss:$8 sps:$4 sm:$0xff]  }
  0x2d   :  { %v1659_v39 = vld [vmem:[#allocation2 + $0xd4] ss:$8 sps:$4 sm:$0xff]   ;;  %v1657_v40 = vld [vmem:[#allocation2 + $0xd0] ss:$8 sps:$4 sm:$0xff]   ;;  %v1662_v41 = vld [vmem:[#allocation2 + $0xe4] ss:$8 sps:$4 sm:$0xff]  }
  0x2e   :  { %448 = vmatpush1.bf16.msra.mxu0 %v1621_v16  ;;  %v1660_v42 = vld [vmem:[#allocation2 + $0xe0] ss:$8 sps:$4 sm:$0xff]   ;;  %v1665_v43 = vld [vmem:[#allocation2 + $0xf4] ss:$8 sps:$4 sm:$0xff]   ;;  %v1663_v44 = vld [vmem:[#allocation2 + $0xf0] ss:$8 sps:$4 sm:$0xff]  }
  0x2f   :  { %449 = vmatprep.subr.bf16.mxu0 %v1626_v17  ;;  %v1666_v45 = vld [vmem:[#allocation2 + $0x100] ss:$8 sps:$4 sm:$0xff]   ;;  %v1668_v46 = vld [vmem:[#allocation2 + $0x104] ss:$8 sps:$4 sm:$0xff]   ;;  %v1671_v47 = vld [vmem:[#allocation2 + $0x114] ss:$8 sps:$4 sm:$0xff]  }
  0x30   :  { %668 = vmatprep.subr.bf16.mxu1 %v1668_v46  ;;  %v1669_v48 = vld [vmem:[#allocation2 + $0x110] ss:$8 sps:$4 sm:$0xff]   ;;  %v1674_v49 = vld [vmem:[#allocation2 + $0x124] ss:$8 sps:$4 sm:$0xff]   ;;  %v1672_v50 = vld [vmem:[#allocation2 + $0x120] ss:$8 sps:$4 sm:$0xff]  }
  0x31   :  { %669 = vmatpush1.bf16.msra.mxu1 %v1666_v45  ;;  %v1677_v51 = vld [vmem:[#allocation2 + $0x134] ss:$8 sps:$4 sm:$0xff]   ;;  %v1675_v52 = vld [vmem:[#allocation2 + $0x130] ss:$8 sps:$4 sm:$0xff]   ;;  %v1680_v53 = vld [vmem:[#allocation2 + $0x144] ss:$8 sps:$4 sm:$0xff]  }
  0x32   :  { %450 = vmatpush1.bf16.msra.mxu0 %v1624_v18  ;;  %670 = vmatprep.subr.bf16.mxu1 %v1671_v47  ;;  %v1678_v54 = vld [vmem:[#allocation2 + $0x140] ss:$8 sps:$4 sm:$0xff]   ;;  %v1683_v55 = vld [vmem:[#allocation2 + $0x154] ss:$8 sps:$4 sm:$0xff]   ;;  %v1681_v56 = vld [vmem:[#allocation2 + $0x150] ss:$8 sps:$4 sm:$0xff]  }
  0x33   :  { %451 = vmatprep.subr.bf16.mxu0 %v1629_v19  ;;  %v1686_v57 = vld [vmem:[#allocation2 + $0x164] ss:$8 sps:$4 sm:$0xff]   ;;  %v1684_v58 = vld [vmem:[#allocation2 + $0x160] ss:$8 sps:$4 sm:$0xff]   ;;  %v1689_v59 = vld [vmem:[#allocation2 + $0x174] ss:$8 sps:$4 sm:$0xff]  }
  0x34   :  { %v1687_v60 = vld [vmem:[#allocation2 + $0x170] ss:$8 sps:$4 sm:$0xff]   ;;  %v1692_v61 = vld [vmem:[#allocation2 + $0x184] ss:$8 sps:$4 sm:$0xff]   ;;  %v1690_v62 = vld [vmem:[#allocation2 + $0x180] ss:$8 sps:$4 sm:$0xff]  }
  0x35   :  { %671 = vmatpush1.bf16.msra.mxu1 %v1669_v48  ;;  %v1695_v63 = vld [vmem:[#allocation2 + $0x194] ss:$8 sps:$4 sm:$0xff]   ;;  %v1693_v0 = vld [vmem:[#allocation2 + $0x190] ss:$8 sps:$4 sm:$0xff]   ;;  %v1698_v1 = vld [vmem:[#allocation2 + $0x1a4] ss:$8 sps:$4 sm:$0xff]  }
  0x36   :  { %452 = vmatpush1.bf16.msra.mxu0 %v1627_v20  ;;  %672 = vmatprep.subr.bf16.mxu1 %v1674_v49  ;;  %v1696_v2 = vld [vmem:[#allocation2 + $0x1a0] ss:$8 sps:$4 sm:$0xff]   ;;  %v1701_v3 = vld [vmem:[#allocation2 + $0x1b4] ss:$8 sps:$4 sm:$0xff]   ;;  %v1699_v4 = vld [vmem:[#allocation2 + $0x1b0] ss:$8 sps:$4 sm:$0xff]  }
  0x37   :  { %453 = vmatprep.subr.bf16.mxu0 %v1632_v21  ;;  %v1704_v5 = vld [vmem:[#allocation2 + $0x1c4] ss:$8 sps:$4 sm:$0xff]   ;;  %v1702_v7 = vld [vmem:[#allocation2 + $0x1c0] ss:$8 sps:$4 sm:$0xff]   ;;  %v1707_v8 = vld [vmem:[#allocation2 + $0x1d4] ss:$8 sps:$4 sm:$0xff]  }
  0x38   :  { %v1705_v9 = vld [vmem:[#allocation2 + $0x1d0] ss:$8 sps:$4 sm:$0xff]   ;;  %v1966_v13 = vshrl.u32 %v243_v10, 7  ;;  %v1974_v15 = vld [vmem:[%s2087_s3] sm:$0x77]  ;;  %s1444_s13 = sshll.u32 %s1881_s12, 4  ;;  %s1445_s13 = int_to_ptr.vmem [resolvable:$true] %s1444_s13 }
  0x39   :  { %673 = vmatpush1.bf16.msra.mxu1 %v1672_v50  ;;  %v1718_v47 = vld [vmem:[#allocation2 + $0x200] ss:$8 sps:$4 sm:$0xff]   ;;  %v1720_v48 = vld [vmem:[#allocation2 + $0x204] ss:$8 sps:$4 sm:$0xff]   ;;  %v1723_v49 = vld [vmem:[#allocation2 + $0x214] ss:$8 sps:$4 sm:$0xff]   ;;  %p1853_p0 = scmp.lt.s32.totalorder %s1445_s13, %s1445_s13 }
  0x3a   :  { %454 = vmatpush1.bf16.msra.mxu0 %v1630_v22  ;;  %674 = vmatprep.subr.bf16.mxu1 %v1677_v51  ;;  %v1969_v14 = vsub.s32 0, %v1966_v13  ;;  %v249_v16 = vsub.s32 4, %v1966_v13  ;;  %v1721_v50 = vld [vmem:[#allocation2 + $0x210] ss:$8 sps:$4 sm:$0xff]   ;;  %v1726_v51 = vld [vmem:[#allocation2 + $0x224] ss:$8 sps:$4 sm:$0xff]  }
  0x3b   :  { %455 = vmatprep.subr.bf16.mxu0 %v1635_v23  ;;  %s1848_s6 = scalar_lea.vmem %s1445_s13, 32 }
  0x3c   :  { %v246_v17 = vrot.slane %v1974_v15, %v1969_v14  ;;  %v250_v18 = vrot.slane %v1974_v15, %v249_v16  ;;  %p1849_p13 = scmp.ne.s32.totalorder %s1445_s13, %s1848_s6  ;;  %p1854_p1 = scmp.lt.s32.totalorder %s1848_s6, %s1848_s6 }
  0x3d   :  { %675 = vmatpush1.bf16.msra.mxu1 %v1675_v52  ;;  %v1724_v52 = vld [vmem:[#allocation2 + $0x220] ss:$8 sps:$4 sm:$0xff]  }
  0x3e   :  { %456 = vmatpush1.bf16.msra.mxu0 %v1633_v24  ;;  %676 = vmatprep.subr.bf16.mxu1 %v1680_v53  ;;  %v256_v19 = vrot.slane %v246_v17, %v1969_v14  ;;  %v260_v22 = vrot.slane %v250_v18, %v1969_v14  ;;  %v1729_v53 = vld [vmem:[#allocation2 + $0x234] ss:$8 sps:$4 sm:$0xff]   ;;  %p1855_p2 = por %p1854_p1, %p1853_p0 }
  0x3f   :  { %457 = vmatprep.subr.bf16.mxu0 %v1638_v25 }
  0x40   :  { %p1856_p3 = pnand %p1855_p2, %p1849_p13 }
  0x41   :  { %677 = vmatpush1.bf16.msra.mxu1 %v1678_v54  ;;  %v1727_v54 = vld [vmem:[#allocation2 + $0x230] ss:$8 sps:$4 sm:$0xff]  }
  0x42   :  { %458 = vmatpush1.bf16.msra.mxu0 %v1636_v26  ;;  %678 = vmatprep.subr.bf16.mxu1 %v1683_v55  ;;  %v1732_v55 = vld [vmem:[#allocation2 + $0x244] ss:$8 sps:$4 sm:$0xff]  }
  0x43   :  { %459 = vmatprep.subr.bf16.mxu0 %v1641_v27 }
  0x45   :  { %679 = vmatpush1.bf16.msra.mxu1 %v1681_v56  ;;  %v1730_v56 = vld [vmem:[#allocation2 + $0x240] ss:$8 sps:$4 sm:$0xff]  }
  0x46   :  { %460 = vmatpush1.bf16.msra.mxu0 %v1639_v28  ;;  %680 = vmatprep.subr.bf16.mxu1 %v1686_v57  ;;  %v1733_v57 = vld [vmem:[#allocation2 + $0x250] ss:$8 sps:$4 sm:$0xff]  }
  0x47   :  { %461 = vmatprep.subr.bf16.mxu0 %v1644_v29 }
  0x49   :  { %681 = vmatpush1.bf16.msra.mxu1 %v1684_v58  ;;  %v1738_v58 = vld [vmem:[#allocation2 + $0x264] ss:$8 sps:$4 sm:$0xff]  }
  0x4a   :  { %462 = vmatpush1.bf16.msra.mxu0 %v1642_v30  ;;  %682 = vmatprep.subr.bf16.mxu1 %v1689_v59  ;;  %v1736_v59 = vld [vmem:[#allocation2 + $0x260] ss:$8 sps:$4 sm:$0xff]  }
  0x4b   :  { %463 = vmatprep.subr.bf16.mxu0 %v1647_v31 }
  0x4d   :  { %683 = vmatpush1.bf16.msra.mxu1 %v1687_v60  ;;  %v1741_v60 = vld [vmem:[#allocation2 + $0x274] ss:$8 sps:$4 sm:$0xff]  }
  0x4e   :  { %464 = vmatpush1.bf16.msra.mxu0 %v1645_v32  ;;  %684 = vmatprep.subr.bf16.mxu1 %v1692_v61  ;;  %v1739_v61 = vld [vmem:[#allocation2 + $0x270] ss:$8 sps:$4 sm:$0xff]  }
  0x4f   :  { %465 = vmatprep.subr.bf16.mxu0 %v1650_v33 }
  0x51   :  { %685 = vmatpush1.bf16.msra.mxu1 %v1690_v62  ;;  %v1744_v62 = vld [vmem:[#allocation2 + $0x284] ss:$8 sps:$4 sm:$0xff]  }
  0x52   :  { %466 = vmatpush1.bf16.msra.mxu0 %v1648_v34  ;;  %686 = vmatprep.subr.bf16.mxu1 %v1695_v63  ;;  %v1742_v63 = vld [vmem:[#allocation2 + $0x280] ss:$8 sps:$4 sm:$0xff]  }
  0x53   :  { %467 = vmatprep.subr.bf16.mxu0 %v1653_v35 }
  0x55   :  { %687 = vmatpush1.bf16.msra.mxu1 %v1693_v0  ;;  %v1747_v0 = vld [vmem:[#allocation2 + $0x294] ss:$8 sps:$4 sm:$0xff]  }
  0x56   :  { %468 = vmatpush1.bf16.msra.mxu0 %v1651_v36  ;;  %688 = vmatprep.subr.bf16.mxu1 %v1698_v1  ;;  %v1745_v1 = vld [vmem:[#allocation2 + $0x290] ss:$8 sps:$4 sm:$0xff]  }
  0x57   :  { %469 = vmatprep.subr.bf16.mxu0 %v1656_v37  ;;  %v1710_v37 = vld [vmem:[#allocation2 + $0x1e4] ss:$8 sps:$4 sm:$0xff]  }
  0x59   :  { %689 = vmatpush1.bf16.msra.mxu1 %v1696_v2  ;;  %v1750_v2 = vld [vmem:[#allocation2 + $0x2a4] ss:$8 sps:$4 sm:$0xff]  }
  0x5a   :  { %470 = vmatpush1.bf16.msra.mxu0 %v1654_v38  ;;  %690 = vmatprep.subr.bf16.mxu1 %v1701_v3  ;;  %v1708_v38 = vld [vmem:[#allocation2 + $0x1e0] ss:$8 sps:$4 sm:$0xff]  }
  0x5b   :  { %471 = vmatprep.subr.bf16.mxu0 %v1659_v39  ;;  %v1713_v39 = vld [vmem:[#allocation2 + $0x1f4] ss:$8 sps:$4 sm:$0xff]   ;;  %v1748_v3 = vld [vmem:[#allocation2 + $0x2a0] ss:$8 sps:$4 sm:$0xff]  }
  0x5d   :  { %691 = vmatpush1.bf16.msra.mxu1 %v1699_v4  ;;  %v1753_v4 = vld [vmem:[#allocation2 + $0x2b4] ss:$8 sps:$4 sm:$0xff]  }
  0x5e   :  { %472 = vmatpush1.bf16.msra.mxu0 %v1657_v40  ;;  %692 = vmatprep.subr.bf16.mxu1 %v1704_v5  ;;  %v1711_v40 = vld [vmem:[#allocation2 + $0x1f0] ss:$8 sps:$4 sm:$0xff]  }
  0x5f   :  { %473 = vmatprep.subr.bf16.mxu0 %v1662_v41  ;;  %v1530_v41 = vld [vmem:[%s2086_s2 + $0x18] sm:$0x33] }
  0x60   :  { %v1751_v5 = vld [vmem:[#allocation2 + $0x2b0] ss:$8 sps:$4 sm:$0xff]  }
  0x61   :  { %693 = vmatpush1.bf16.msra.mxu1 %v1702_v7  ;;  %v2001_v7 = vsub.s32 1, %v1966_v13 }
  0x62   :  { %474 = vmatpush1.bf16.msra.mxu0 %v1660_v42  ;;  %694 = vmatprep.subr.bf16.mxu1 %v1707_v8  ;;  %v1534_v42 = vcombine.high %v1530_v41, %v1530_v41  ;;  %v273_v8 = vsub.s32 5, %v1966_v13 }
  0x63   :  { %475 = vmatprep.subr.bf16.mxu0 %v1665_v43  ;;  %v1991_v43 = vld [vmem:[%s2086_s2 + $0x10] sm:$0xff] }
  0x64   :  { %v1538_v45 = vcombine.high %v1991_v43, %v1991_v43  ;;  %v274_v17 = vrot.slane %v1974_v15, %v273_v8 }
  0x65   :  { %695 = vmatpush1.bf16.msra.mxu1 %v1705_v9  ;;  %v270_v9 = vrot.slane %v1974_v15, %v2001_v7 }
  0x66   :  { %476 = vmatpush1.bf16.msra.mxu0 %v1663_v44  ;;  %696 = vmatprep.subr.bf16.mxu1 %v1710_v37  ;;  %v1533_v44 = vcombine.low %v1530_v41, %v1530_v41  ;;  %v1757_v37 = vld [vmem:[#allocation2 + $0x2d0] ss:$8 sps:$4 sm:$0xff]   ;;  %v1760_v41 = vld [vmem:[#allocation2 + $0x2e0] ss:$8 sps:$4 sm:$0xff]  }
  0x67   :  { %1535 = vmatprep.subr.msk.bf16.mxu0 %vm137_vm0, %v1534_v42  ;;  %v280_v18 = vrot.slane %v270_v9, %v2001_v7  ;;  %v1763_v42 = vld [vmem:[#allocation2 + $0x2f0] ss:$8 sps:$4 sm:$0xff]  }
  0x68   :  { %v832_v46 = vsel %vm137_vm0, %v1533_v44, 0 }
  0x69   :  { %697 = vmatpush1.bf16.msra.mxu1 %v1708_v38 }
  0x6a   :  { %698 = vmatprep.subr.bf16.mxu1 %v1713_v39 }
  0x6d   :  { %699 = vmatpush1.bf16.msra.mxu1 %v1711_v40  ;;  %v1762_v40 = vld [vmem:[#allocation2 + $0x2e4] ss:$8 sps:$4 sm:$0xff]  }
  0x6e   :  { %1539 = vmatprep.subr.msk.bf16.mxu1 %vm194_vm1, %v1538_v45 }
  0xfc   :  { %v178_v20 = vpop.f32.mrb[0].mxu0  ;;  %v235_v21 = vpop.f32.mrb[0].mxu1 }
  0xfd   :  { %v236_v23 = vadd.f32 %v235_v21, %v178_v20  ;;  %v180_v24 = vpop.f32.mrb[1].mxu0  ;;  %v237_v25 = vpop.f32.mrb[1].mxu1 }
  0xfe   :  { %v238_v26 = vadd.f32 %v237_v25, %v180_v24  ;;  %v182_v27 = vpop.f32.mrb[2].mxu0  ;;  %v239_v28 = vpop.f32.mrb[2].mxu1 }
  0xff   :  { %v261_v29 = vadd.f32 %v256_v19, %v236_v23  ;;  %v183_v30 = vpop.f32.mrb[3].mxu0  ;;  %v240_v31 = vpop.f32.mrb[3].mxu1  ;;  %v284_v19 = vrot.slane %v274_v17, %v2001_v7  ;;  %v1537_v27 = vcombine.low %v1991_v43, %v1991_v43  ;;  %v496_v43 = vsub.s32 6, %v1966_v13 }
 0x100   :  { %v262_v32 = vadd.f32 %v260_v22, %v238_v26 }
 0x101   :  { %v263_v33 = vmax.f32 %v261_v29, 0.0  ;;  %v884_v31 = vsel %vm194_vm1, %v1537_v27, 0  ;;  %v497_v45 = vrot.slane %v1974_v15, %v496_v43 }
 0x102   :  { %v264_v34 = vmax.f32 %v262_v32, 0.0  ;;  %v1756_v32 = vld [vmem:[#allocation2 + $0x2c4] ss:$8 sps:$4 sm:$0xff]  }
 0x103   :  { %v265_v36 = vpack.c.bf16 %v263_v33, %v263_v33  ;;  %v1754_v33 = vld [vmem:[#allocation2 + $0x2c0] ss:$8 sps:$4 sm:$0xff]  }
 0x104   :  { %v266_v35 = vpack.c.bf16 %v264_v34, %v264_v34 }
 0x106   :  { %477 = vmatprep.mubr.bf16.mxu0 %v266_v35  ;;  %v1759_v35 = vld [vmem:[#allocation2 + $0x2d4] ss:$8 sps:$4 sm:$0xff]  }
 0x107   :  { %478 = vmatmul.mubr.bf16.vlgmr.msra.gmra.mrb[4].mxu0 %v265_v36 }
 0x108   :  { %869 = vmatprep.mubr.bf16.mxu0 %v1880_v6  ;;  %838 = vmatpush1.bf16.msra.mxu0 %v832_v46  ;;  %v127_v46 = vld [vmem:[%s2089_s5] sm:$0x3] }
 0x109   :  { %1133 = vmatprep.subr.bf16.mxu0 %v1720_v48  ;;  %v715_v48 = vunpack.c.l.bf16 %v127_v46  ;;  %v1790_v46 = vld [vmem:[#allocation2 + $0x380] ss:$8 sps:$4 sm:$0xff]  }
 0x10f   :  { %1536 = vmatmul.mubr.msk.bf16.vlgmr.msra.gmra.mrb[8].mxu0 %vm133_vm2, %v1957_v11  ;;  %v1735_v11 = vld [vmem:[#allocation2 + $0x254] ss:$8 sps:$4 sm:$0xff]  }
 0x110   :  { %1134 = vmatpush1.bf16.msra.mxu0 %v1718_v47 }
 0x111   :  { %1135 = vmatprep.subr.bf16.mxu0 %v1723_v49 }
 0x114   :  { %1136 = vmatpush1.bf16.msra.mxu0 %v1721_v50 }
 0x115   :  { %1137 = vmatprep.subr.bf16.mxu0 %v1726_v51  ;;  %v2034_v51 = vld [vmem:[%s2087_s3 + $0x8] sm:$0x77]  ;;  %s740_s3 = sld [smem:[#allocation6]] }
 0x118   :  { %1138 = vmatpush1.bf16.msra.mxu0 %v1724_v52 }
 0x119   :  { %1139 = vmatprep.subr.bf16.mxu0 %v1729_v53 }
 0x11c   :  { %1140 = vmatpush1.bf16.msra.mxu0 %v1727_v54  ;;  %v720_v54 = vrot.slane %v715_v48, %v1969_v14 }
 0x11d   :  { %1141 = vmatprep.subr.bf16.mxu0 %v1732_v55 }
 0x120   :  { %1142 = vmatpush1.bf16.msra.mxu0 %v1730_v56 }
 0x121   :  { %1143 = vmatprep.subr.bf16.mxu0 %v1735_v11 }
 0x124   :  { %1144 = vmatpush1.bf16.msra.mxu0 %v1733_v57 }
 0x125   :  { %1145 = vmatprep.subr.bf16.mxu0 %v1738_v58  ;;  %v934_v58 = vrot.slane %v2034_v51, %v1969_v14 }
 0x128   :  { %1146 = vmatpush1.bf16.msra.mxu0 %v1736_v59 }
 0x129   :  { %1147 = vmatprep.subr.bf16.mxu0 %v1741_v60  ;;  %v938_v60 = vrot.slane %v2034_v51, %v249_v16 }
 0x12c   :  { %1148 = vmatpush1.bf16.msra.mxu0 %v1739_v61 }
 0x12d   :  { %1149 = vmatprep.subr.bf16.mxu0 %v1744_v62  ;;  %v730_v62 = vrot.slane %v720_v54, %v1969_v14  ;;  %v1804_v54 = vld [vmem:[#allocation2 + $0x3c4] ss:$8 sps:$4 sm:$0xff]  }
 0x130   :  { %1150 = vmatpush1.bf16.msra.mxu0 %v1742_v63 }
 0x131   :  { %1151 = vmatprep.subr.bf16.mxu0 %v1747_v0 }
 0x134   :  { %1152 = vmatpush1.bf16.msra.mxu0 %v1745_v1 }
 0x135   :  { %1153 = vmatprep.subr.bf16.mxu0 %v1750_v2  ;;  %v944_v2 = vrot.slane %v934_v58, %v1969_v14  ;;  %v1813_v58 = vld [vmem:[#allocation2 + $0x3f4] ss:$8 sps:$4 sm:$0xff]  }
 0x138   :  { %1154 = vmatpush1.bf16.msra.mxu0 %v1748_v3 }
 0x139   :  { %1155 = vmatprep.subr.bf16.mxu0 %v1753_v4 }
 0x13c   :  { %1156 = vmatpush1.bf16.msra.mxu0 %v1751_v5  ;;  %v948_v5 = vrot.slane %v938_v60, %v1969_v14  ;;  %v745_v60 = vand.u32 127, %v243_v10 }
 0x13d   :  { %1157 = vmatprep.subr.bf16.mxu0 %v1756_v32  ;;  %v1769_v32 = vld [vmem:[#allocation2 + $0x310] ss:$8 sps:$4 sm:$0xff]  }
 0x140   :  { %1158 = vmatpush1.bf16.msra.mxu0 %v1754_v33  ;;  %v1774_v33 = vld [vmem:[#allocation2 + $0x324] ss:$8 sps:$4 sm:$0xff]  }
 0x141   :  { %1159 = vmatprep.subr.bf16.mxu0 %v1759_v35  ;;  %v1777_v35 = vld [vmem:[#allocation2 + $0x334] ss:$8 sps:$4 sm:$0xff]  }
 0x144   :  { %1160 = vmatpush1.bf16.msra.mxu0 %v1757_v37  ;;  %v1780_v37 = vld [vmem:[#allocation2 + $0x344] ss:$8 sps:$4 sm:$0xff]  }
 0x145   :  { %1161 = vmatprep.subr.bf16.mxu0 %v1762_v40  ;;  %v1781_v40 = vld [vmem:[#allocation2 + $0x350] ss:$8 sps:$4 sm:$0xff]  }
 0x148   :  { %1162 = vmatpush1.bf16.msra.mxu0 %v1760_v41  ;;  %v1786_v41 = vld [vmem:[#allocation2 + $0x364] ss:$8 sps:$4 sm:$0xff]  }
 0x1da   :  { %v479_v20 = vpop.f32.mrb[4].mxu0 }
 0x1db   :  { %v480_v21 = vadd.f32 %v479_v20, %v280_v18  ;;  %v481_v22 = vpop.f32.mrb[5].mxu0 }
 0x1dc   :  { %v482_v23 = vadd.f32 %v481_v22, %v284_v19  ;;  %v483_v24 = vpop.f32.mrb[6].mxu0 }
 0x1dd   :  { %v486_v25 = vmax.f32 %v480_v21, 0.0  ;;  %v484_v26 = vpop.f32.mrb[7].mxu0 }
 0x1de   :  { %v487_v28 = vmax.f32 %v482_v23, 0.0 }
 0x1df   :  { %v488_v30 = vpack.c.bf16 %v486_v25, %v486_v25 }
 0x1e0   :  { %v489_v29 = vpack.c.bf16 %v487_v28, %v487_v28 }
 0x1e2   :  { %700 = vmatprep.mubr.bf16.mxu1 %v489_v29  ;;  %v871_v34 = vpop.f32.mrb[8].mxu0  ;;  %v1766_v29 = vld [vmem:[#allocation2 + $0x300] ss:$8 sps:$4 sm:$0xff]  }
 0x1e3   :  { %701 = vmatmul.mubr.bf16.vlgmr.msra.gmra.mrb[4].mxu1 %v488_v30  ;;  %v873_v36 = vpop.f32.mrb[9].mxu0  ;;  %v1768_v30 = vld [vmem:[#allocation2 + $0x304] ss:$8 sps:$4 sm:$0xff]  }
 0x1e4   :  { %890 = vmatpush1.bf16.msra.mxu1 %v884_v31  ;;  %921 = vmatprep.mubr.bf16.mxu1 %v1880_v6  ;;  %v875_v38 = vpop.f32.mrb[10].mxu0  ;;  %v1765_v6 = vld [vmem:[#allocation2 + $0x2f4] ss:$8 sps:$4 sm:$0xff]  }
 0x1e5   :  { %v876_v39 = vpop.f32.mrb[11].mxu0  ;;  %1163 = vmatprep.subr.bf16.mxu0 %v1765_v6  ;;  %v1771_v31 = vld [vmem:[#allocation2 + $0x314] ss:$8 sps:$4 sm:$0xff]   ;;  %1356 = vmatprep.subr.bf16.mxu1 %v1768_v30  ;;  %v1778_v38 = vld [vmem:[#allocation2 + $0x340] ss:$8 sps:$4 sm:$0xff]  }
 0x1e6   :  { %1164 = vmatpush1.bf16.msra.mxu0 %v1763_v42  ;;  %v1783_v39 = vld [vmem:[#allocation2 + $0x354] ss:$8 sps:$4 sm:$0xff]   ;;  %v1784_v6 = vld [vmem:[#allocation2 + $0x360] ss:$8 sps:$4 sm:$0xff]  }
 0x1e7   :  { %v1789_v42 = vld [vmem:[#allocation2 + $0x374] ss:$8 sps:$4 sm:$0xff]  }
 0x1eb   :  { %1540 = vmatmul.mubr.msk.bf16.vlgmr.msra.gmra.mrb[8].mxu1 %vm190_vm3, %v1959_v12  ;;  %v2018_v12 = vsub.s32 2, %v1966_v13 }
 0x1ec   :  { %1357 = vmatpush1.bf16.msra.mxu1 %v1766_v29 }
 0x1ed   :  { %v493_v44 = vrot.slane %v1974_v15, %v2018_v12  ;;  %v507_v49 = vrot.slane %v497_v45, %v2018_v12  ;;  %v724_v56 = vrot.slane %v715_v48, %v2018_v12  ;;  %1358 = vmatprep.subr.bf16.mxu1 %v1771_v31  ;;  %v1792_v45 = vld [vmem:[#allocation2 + $0x384] ss:$8 sps:$4 sm:$0xff]   ;;  %v1793_v48 = vld [vmem:[#allocation2 + $0x390] ss:$8 sps:$4 sm:$0xff]  }
 0x1ef   :  { %v503_v47 = vrot.slane %v493_v44, %v2018_v12  ;;  %v734_v0 = vrot.slane %v724_v56, %v1969_v14  ;;  %v1787_v44 = vld [vmem:[#allocation2 + $0x370] ss:$8 sps:$4 sm:$0xff]  }
 0x1f0   :  { %1359 = vmatpush1.bf16.msra.mxu1 %v1769_v32  ;;  %v1805_v56 = vld [vmem:[#allocation2 + $0x3d0] ss:$8 sps:$4 sm:$0xff]  }
 0x1f1   :  { %1360 = vmatprep.subr.bf16.mxu1 %v1774_v33 }
 0x2b6   :  { %v702_v50 = vpop.f32.mrb[4].mxu1 }
 0x2b7   :  { %v703_v52 = vadd.f32 %v702_v50, %v503_v47  ;;  %v704_v53 = vpop.f32.mrb[5].mxu1  ;;  %v1795_v47 = vld [vmem:[#allocation2 + $0x394] ss:$8 sps:$4 sm:$0xff]   ;;  %v1796_v50 = vld [vmem:[#allocation2 + $0x3a0] ss:$8 sps:$4 sm:$0xff]  }
 0x2b8   :  { %v705_v15 = vadd.f32 %v704_v53, %v507_v49  ;;  %v706_v55 = vpop.f32.mrb[6].mxu1  ;;  %v1798_v49 = vld [vmem:[#allocation2 + $0x3a4] ss:$8 sps:$4 sm:$0xff]   ;;  %v1799_v53 = vld [vmem:[#allocation2 + $0x3b0] ss:$8 sps:$4 sm:$0xff]  }
 0x2b9   :  { %v709_v11 = vmax.f32 %v703_v52, 0.0  ;;  %v707_v57 = vpop.f32.mrb[7].mxu1  ;;  %v1801_v52 = vld [vmem:[#allocation2 + $0x3b4] ss:$8 sps:$4 sm:$0xff]  }
 0x2ba   :  { %v710_v59 = vmax.f32 %v705_v15, 0.0  ;;  %v1802_v15 = vld [vmem:[#allocation2 + $0x3c0] ss:$8 sps:$4 sm:$0xff]   ;;  %v1807_v55 = vld [vmem:[#allocation2 + $0x3d4] ss:$8 sps:$4 sm:$0xff]  }
 0x2bb   :  { %v711_v61 = vpack.c.bf16 %v709_v11, %v709_v11  ;;  %v1810_v11 = vld [vmem:[#allocation2 + $0x3e4] ss:$8 sps:$4 sm:$0xff]   ;;  %v1808_v57 = vld [vmem:[#allocation2 + $0x3e0] ss:$8 sps:$4 sm:$0xff]  }
 0x2bc   :  { %v712_v63 = vpack.c.bf16 %v710_v59, %v710_v59  ;;  %v1811_v59 = vld [vmem:[#allocation2 + $0x3f0] ss:$8 sps:$4 sm:$0xff]  }
 0x2bd   :  { %v713_v1 = vunpack.c.l.bf16 %v711_v61  ;;  %v741_v61 = vstv %s740_s3 }
 0x2be   :  { %v714_v3 = vunpack.c.l.bf16 %v712_v63  ;;  %v923_v4 = vpop.f32.mrb[8].mxu1 }
 0x2bf   :  { %v924_v9 = vadd.f32 %v923_v4, %v871_v34  ;;  %v925_v17 = vpop.f32.mrb[9].mxu1  ;;  %v735_v18 = vmul.f32 %v730_v62, %v713_v1  ;;  %v1772_v34 = vld [vmem:[#allocation2 + $0x320] ss:$8 sps:$4 sm:$0xff]   ;;  %v748_v62 = vsub.s32 %v745_v60, %v1966_v13 }
 0x2c0   :  { %v926_v19 = vadd.f32 %v925_v17, %v873_v36  ;;  %v927_v20 = vpop.f32.mrb[10].mxu1  ;;  %v736_v21 = vmul.f32 %v734_v0, %v714_v3  ;;  %1361 = vmatpush1.bf16.msra.mxu1 %v1772_v34  ;;  %v1775_v36 = vld [vmem:[#allocation2 + $0x330] ss:$8 sps:$4 sm:$0xff]   ;;  %v962_v3 = vrot.slane %v2034_v51, %v273_v8  ;;  %v1185_v8 = vrot.slane %v2034_v51, %v496_v43 }
 0x2c1   :  { %v949_v16 = vadd.f32 %v944_v2, %v924_v9  ;;  %v928_v22 = vpop.f32.mrb[11].mxu1  ;;  %1362 = vmatprep.subr.bf16.mxu1 %v1777_v35  ;;  %v958_v2 = vrot.slane %v2034_v51, %v2001_v7 }
 0x2c2   :  { %v950_v23 = vadd.f32 %v948_v5, %v926_v19  ;;  %v737_v24 = vadd.f32 %v736_v21, %v735_v18  ;;  %v972_v10 = vrot.slane %v962_v3, %v2001_v7 }
 0x2c3   :  { %v951_v25 = vmax.f32 %v949_v16, 0.0  ;;  %v968_v4 = vrot.slane %v958_v2, %v2001_v7  ;;  %v1532_v7 = vld [vmem:[%s2089_s5 + $0x2] sm:$0x3]  ;;  %s1605_s5 = sld [smem:[#allocation6 + $0x1]] }
 0x2c4   :  { %v952_v26 = vmax.f32 %v950_v23, 0.0  ;;  %738 = vadd.xlane.f32.xlu0 %v737_v24  ;;  %1363 = vmatpush1.bf16.msra.mxu1 %v1775_v36  ;;  %v1181_v24 = vrot.slane %v2034_v51, %v2018_v12 }
 0x2c5   :  { %v953_v28 = vpack.c.bf16 %v951_v25, %v951_v25  ;;  %1364 = vmatprep.subr.bf16.mxu1 %v1780_v37 }
 0x2c6   :  { %v954_v27 = vpack.c.bf16 %v952_v26, %v952_v26  ;;  %v1191_v25 = vrot.slane %v1181_v24, %v2018_v12  ;;  %v1403_v26 = vunpack.c.l.bf16 %v1532_v7 }
 0x2c8   :  { %1165 = vmatprep.mubr.bf16.mxu0 %v954_v27  ;;  %1365 = vmatpush1.bf16.msra.mxu1 %v1778_v38  ;;  %v1195_v27 = vrot.slane %v1185_v8, %v2018_v12  ;;  %v1408_v31 = vrot.slane %v1403_v26, %v1969_v14  ;;  %v1412_v13 = vrot.slane %v1403_v26, %v2018_v12 }
 0x2c9   :  { %1166 = vmatmul.mubr.bf16.vlgmr.msra.gmra.mrb[12].mxu0 %v953_v28  ;;  %1366 = vmatprep.subr.bf16.mxu1 %v1783_v39 }
 0x2ca   :  { %v1418_v36 = vrot.slane %v1408_v31, %v1969_v14  ;;  %v1422_v38 = vrot.slane %v1412_v13, %v1969_v14 }
 0x2cc   :  { %1367 = vmatpush1.bf16.msra.mxu1 %v1781_v40 }
 0x2cd   :  { %1368 = vmatprep.subr.bf16.mxu1 %v1786_v41 }
 0x2d0   :  { %1369 = vmatpush1.bf16.msra.mxu1 %v1784_v6 }
 0x2d1   :  { %1370 = vmatprep.subr.bf16.mxu1 %v1789_v42 }
 0x2d4   :  { %1371 = vmatpush1.bf16.msra.mxu1 %v1787_v44  ;;  %v1429_v44 = vstv %s1605_s5 }
 0x2d5   :  { %1372 = vmatprep.subr.bf16.mxu1 %v1792_v45 }
 0x2d8   :  { %1373 = vmatpush1.bf16.msra.mxu1 %v1790_v46 }
 0x2d9   :  { %1374 = vmatprep.subr.bf16.mxu1 %v1795_v47 }
 0x2dc   :  { %1375 = vmatpush1.bf16.msra.mxu1 %v1793_v48 }
 0x2dd   :  { %1376 = vmatprep.subr.bf16.mxu1 %v1798_v49 }
 0x2e0   :  { %1377 = vmatpush1.bf16.msra.mxu1 %v1796_v50 }
 0x2e1   :  { %1378 = vmatprep.subr.bf16.mxu1 %v1801_v52 }
 0x2e4   :  { %1379 = vmatpush1.bf16.msra.mxu1 %v1799_v53 }
 0x2e5   :  { %1380 = vmatprep.subr.bf16.mxu1 %v1804_v54 }
 0x2e8   :  { %1381 = vmatpush1.bf16.msra.mxu1 %v1802_v15 }
 0x2e9   :  { %1382 = vmatprep.subr.bf16.mxu1 %v1807_v55 }
 0x2ec   :  { %1383 = vmatpush1.bf16.msra.mxu1 %v1805_v56 }
 0x2ed   :  { %1384 = vmatprep.subr.bf16.mxu1 %v1810_v11 }
 0x2f0   :  { %1385 = vmatpush1.bf16.msra.mxu1 %v1808_v57 }
 0x2f1   :  { %1386 = vmatprep.subr.bf16.mxu1 %v1813_v58 }
 0x2f4   :  { %1387 = vmatpush1.bf16.msra.mxu1 %v1811_v59 }
 0x351   :  { %v739_v63 = vpop.xlane.xlu0 %738 }
 0x352   :  { %v742_v0 = vadd.f32 %v741_v61, %v739_v63 }
 0x354   :  { %v749_v1 = vrot.slane %v742_v0, %v748_v62 }
 0x356   :  { %752 = vst.msk [vmem:[#allocation7] sm:$0x1] %vm751_vm4, %v749_v1 }
 0x39c   :  { %v1167_v5 = vpop.f32.mrb[12].mxu0 }
 0x39d   :  { %v1168_v9 = vadd.f32 %v1167_v5, %v968_v4  ;;  %v1169_v17 = vpop.f32.mrb[13].mxu0 }
 0x39e   :  { %v1170_v18 = vadd.f32 %v1169_v17, %v972_v10  ;;  %v1171_v19 = vpop.f32.mrb[14].mxu0 }
 0x39f   :  { %v1174_v20 = vmax.f32 %v1168_v9, 0.0  ;;  %v1172_v21 = vpop.f32.mrb[15].mxu0 }
 0x3a0   :  { %v1175_v16 = vmax.f32 %v1170_v18, 0.0 }
 0x3a1   :  { %v1176_v23 = vpack.c.bf16 %v1174_v20, %v1174_v20 }
 0x3a2   :  { %v1177_v22 = vpack.c.bf16 %v1175_v16, %v1175_v16 }
 0x3a4   :  { %1388 = vmatprep.mubr.bf16.mxu1 %v1177_v22 }
 0x3a5   :  { %1389 = vmatmul.mubr.bf16.vlgmr.msra.gmra.mrb[12].mxu1 %v1176_v23 }
 0x478   :  { %v1390_v28 = vpop.f32.mrb[12].mxu1 }
 0x479   :  { %v1391_v29 = vadd.f32 %v1390_v28, %v1191_v25  ;;  %v1392_v30 = vpop.f32.mrb[13].mxu1 }
 0x47a   :  { %v1393_v32 = vadd.f32 %v1392_v30, %v1195_v27  ;;  %v1394_v33 = vpop.f32.mrb[14].mxu1 }
 0x47b   :  { %v1397_v34 = vmax.f32 %v1391_v29, 0.0  ;;  %v1395_v43 = vpop.f32.mrb[15].mxu1 }
 0x47c   :  { %v1398_v51 = vmax.f32 %v1393_v32, 0.0 }
 0x47d   :  { %v1399_v35 = vpack.c.bf16 %v1397_v34, %v1397_v34 }
 0x47e   :  { %v1400_v37 = vpack.c.bf16 %v1398_v51, %v1398_v51 }
 0x47f   :  { %v1401_v39 = vunpack.c.l.bf16 %v1399_v35 }
 0x480   :  { %v1402_v40 = vunpack.c.l.bf16 %v1400_v37 }
 0x481   :  { %v1423_v41 = vmul.f32 %v1418_v36, %v1401_v39 }
 0x482   :  { %v1424_v6 = vmul.f32 %v1422_v38, %v1402_v40 }
 0x484   :  { %v1425_v42 = vadd.f32 %v1424_v6, %v1423_v41 }
 0x486   :  { %1426 = vadd.xlane.f32.xlu0 %v1425_v42 }
 0x513   :  { %v1427_v12 = vpop.xlane.xlu0 %1426 }
 0x514   :  { %v1430_v45 = vadd.f32 %v1429_v44, %v1427_v12 }
 0x516   :  { %v1435_v46 = vrot.slane %v1430_v45, %v748_v62 }
 0x518   :  { %1438 = vst.msk [vmem:[#allocation7 + $0x1] sm:$0x1] %vm751_vm4, %v1435_v46 }
 0x519   :  { %1859 = shalt.err (!%p1856_p3)
}
 0x51a   :  { %s1860_s16 = scalar_lea.hbm %s2091_s7, 32 }
 0x51b   :  { %p1861_p4 = scmp.ne.s32.totalorder %s2091_s7, %s1860_s16  ;;  %p1864_p5 = scmp.lt.u32.totalorder %s1860_s16, %s2091_s7 }
 0x51d   :  { %p1866_p6 = pnand %p1864_p5, %p1861_p4 }
 0x51f   :  { %1869 = shalt.err (!%p1866_p6)
}
 0x520   :  { %s1882_s4 = smov 16   ;;  %s1883_s21 = smov 1  }
 0x521   :  { %1450 = dma.vmem_to_hbm [thread:$0]  %s1445_s13, 32, %s2091_s7, [#allocation4], %s1882_s4, %s1882_s4, %s1883_s21  }
 0x522   :  { %1874 = dma.done.wait [#allocation4], 32  }
 0x523   :  { %1875 = vsyncadd [#allocation4], 4294967264 }
 0x524   :  { %1454 = vsyncpa [#allocation3], 1 }
 0x525   :  { %1455 = vsyncpa [#allocation4], 1 }
 0x526   :  { %1456 = vsyncpa [#allocation5], 1 }

</bundles_post_ra>
